<compile_context>
chip_gen: v6e
topology: v6e:2x2x1
jax: 0.10.0
libtpu: 0.0.40
codegen_flags: <defaults>
</compile_context>

<pallas_src>
import functools

import jax
import jax.numpy as jnp
from jax.experimental import pallas as pl
from jax.experimental.pallas import tpu as pltpu

KSIZE = 7
HALO = 8            # sublane-aligned history window; must be >= KSIZE - 1
LN_EPS = 1e-5


def _round_up(x, m):
    return (x + m - 1) // m * m


def _convnext_kernel(halo_ref, x_ref, dww_ref, dwb_ref, lnw_ref, lnb_ref,
                     w1_ref, b1_ref, w2_ref, b2_ref, gamma_ref, o_ref):
    # halo_ref: (HALO, C)  last HALO input rows before this tile (zeros @ t=0)
    # x_ref   : (TT, C)    current time tile (also the residual)
    # o_ref   : (TT, C)
    tt, _ = x_ref.shape
    k = dww_ref.shape[0]

    x = x_ref[...].astype(jnp.float32)                 # (TT, C)
    halo = halo_ref[...].astype(jnp.float32)           # (HALO, C)
    win = jnp.concatenate([halo, x], axis=0)           # (TT + HALO, C)
    n = tt + HALO

    wk = dww_ref[...].astype(jnp.float32)              # (K, C)

    # Causal depthwise conv: y[t] = sum_j wk[j] * x_global[t - (K-1) + j] + b.
    # Tap j lives at window offset HALO - (K-1) + j.  The last tap (j = K-1)
    # is the tile itself (offset HALO -> already aligned, no shift needed).
    acc = x * wk[k - 1][None, :]
    for j in range(k - 1):
        off = HALO - (k - 1) + j                        # 2 .. HALO-1
        rolled = pltpu.roll(win, n - off, axis=0)       # rolled[i] = win[i+off]
        acc = acc + rolled[:tt, :] * wk[j][None, :]
    y = acc + dwb_ref[...]                              # (1, C) broadcast

    # LayerNorm over channels -- fused single-pass statistics (f32).
    inv_c = 1.0 / y.shape[-1]
    mean = jnp.sum(y, axis=-1, keepdims=True) * inv_c
    ex2 = jnp.sum(y * y, axis=-1, keepdims=True) * inv_c
    var = ex2 - mean * mean
    yn = (y - mean) * jax.lax.rsqrt(var + LN_EPS)
    yn = yn * lnw_ref[...] + lnb_ref[...]

    # pwconv1 -> tanh-GELU -> pwconv2 on the MXU (bf16 in, f32 accumulation).
    h = jnp.dot(yn.astype(jnp.bfloat16), w1_ref[...],
                preferred_element_type=jnp.float32) + b1_ref[...]
    h = jax.nn.gelu(h, approximate=True)                # tanh approximation
    z = jnp.dot(h.astype(jnp.bfloat16), w2_ref[...],
                preferred_element_type=jnp.float32) + b2_ref[...]

    # layer scale + residual (lane-dense output store: C multiple of 128).
    o_ref[...] = (z * gamma_ref[...] + x).astype(o_ref.dtype)


def convnext_block_btc(x_btc, params, *, time_tile=256,
                       vmem_limit_bytes=64 * 1024 * 1024):
    """Channels-last ConvNeXt block: (B, T, C) -> (B, T, C)."""
    dw_w, dw_b, ln_w, ln_b, w1, b1, w2, b2, gamma = params
    B, T, C = x_btc.shape
    K = dw_w.shape[-1]
    I = w1.shape[0]
    assert K - 1 <= HALO

    # Time tile: multiple of 8 sublanes; pad T up so it divides evenly.
    # (End padding is harmless: the conv is causal; padded rows are sliced
    # off after the call and never feed back into valid rows.)
    TT = max(8, min(_round_up(time_tile, 8), _round_up(T, 8)))
    Tp = _round_up(T, TT)
    nT = Tp // TT
    if Tp != T:
        x_btc = jnp.pad(x_btc, ((0, 0), (0, Tp - T), (0, 0)))

    # Halo tensor: x_halo[b, t] = the HALO rows immediately preceding tile t
    # (zeros for t == 0).  Small: B * nT * HALO * C elements (~HALO/TT of x);
    # XLA fuses the pad + slice so the full shifted copy never materializes.
    x_shift = jnp.pad(x_btc, ((0, 0), (HALO, 0), (0, 0)))[:, :Tp, :]
    x_halo = x_shift.reshape(B, nT, TT, C)[:, :, :HALO, :]      # (B,nT,HALO,C)

    # Parameter massaging (plain JAX glue, constant-folded under jit).
    f32 = jnp.float32
    dw_w_kc = jnp.transpose(dw_w[:, 0, :], (1, 0)).astype(f32)  # (K, C)
    dw_b_2d = dw_b.reshape(1, C).astype(f32)
    ln_w_2d = ln_w.reshape(1, C).astype(f32)
    ln_b_2d = ln_b.reshape(1, C).astype(f32)
    w1_t = jnp.transpose(w1, (1, 0)).astype(jnp.bfloat16)       # (C, I)
    b1_2d = b1.reshape(1, I).astype(f32)
    w2_t = jnp.transpose(w2, (1, 0)).astype(jnp.bfloat16)       # (I, C)
    b2_2d = b2.reshape(1, C).astype(f32)
    gamma_2d = gamma.reshape(1, C).astype(f32)

    def _const(shape):
        return pl.BlockSpec(shape, lambda b, t: (0,) * len(shape))

    itm = x_btc.dtype.itemsize
    param_bytes = (dw_w_kc.size + dw_b_2d.size + ln_w_2d.size + ln_b_2d.size
                   + b1_2d.size + b2_2d.size + gamma_2d.size) * 4 \
                  + (w1_t.size + w2_t.size) * 2
    cost = pl.CostEstimate(
        flops=int(4 * B * Tp * C * I + 2 * B * Tp * C * K),
        transcendentals=int(B * Tp * I),
        bytes_accessed=int(2 * B * Tp * C * itm + B * nT * HALO * C * itm
                           + param_bytes),
    )

    out = pl.pallas_call(
        _convnext_kernel,
        out_shape=jax.ShapeDtypeStruct((B, Tp, C), x_btc.dtype),
        grid_spec=pltpu.PrefetchScalarGridSpec(
            num_scalar_prefetch=0,
            grid=(B, nT),
            in_specs=[
                pl.BlockSpec((None, None, HALO, C), lambda b, t: (b, t, 0, 0)),
                pl.BlockSpec((None, TT, C), lambda b, t: (b, t, 0)),
                _const((K, C)),        # depthwise weight
                _const((1, C)),        # depthwise bias
                _const((1, C)),        # LN weight
                _const((1, C)),        # LN bias
                _const((C, I)),        # pwconv1 weight^T (bf16)
                _const((1, I)),        # pwconv1 bias
                _const((I, C)),        # pwconv2 weight^T (bf16)
                _const((1, C)),        # pwconv2 bias
                _const((1, C)),        # gamma
            ],
            out_specs=pl.BlockSpec((None, TT, C), lambda b, t: (b, t, 0)),
        ),
        compiler_params=pltpu.CompilerParams(
            dimension_semantics=("parallel", "parallel"),
            vmem_limit_bytes=vmem_limit_bytes,
        ),
        cost_estimate=cost,
    )(x_halo, x_btc, dw_w_kc, dw_b_2d, ln_w_2d, ln_b_2d,
      w1_t, b1_2d, w2_t, b2_2d, gamma_2d)

    return out[:, :T, :]


def convnext_block(x_nct, params, **kwargs):
    """PyTorch-layout wrapper: x (B, C, T) -> (B, C, T)."""
    # TODO(synk): keep activations channels-last across the whole model to
    # drop these two full-tensor HBM transposes (use convnext_block_btc).
    x_btc = jnp.transpose(x_nct, (0, 2, 1))
    out_btc = convnext_block_btc(x_btc, params, **kwargs)
    return jnp.transpose(out_btc, (0, 2, 1))


def _reference(x_nct, params):
    """Pure-JAX f32 reference of the PyTorch forward (sanity check)."""
    dw_w, dw_b, ln_w, ln_b, w1, b1, w2, b2, gamma = params
    B, C, T = x_nct.shape
    K = dw_w.shape[-1]
    x = jnp.transpose(x_nct, (0, 2, 1))                          # (B, T, C)
    xp = jnp.pad(x, ((0, 0), (K - 1, 0), (0, 0)))
    w_kc = jnp.transpose(dw_w[:, 0, :], (1, 0))                  # (K, C)
    y = sum(xp[:, j:j + T, :] * w_kc[j][None, None, :] for j in range(K)) + dw_b
    mean = jnp.mean(y, axis=-1, keepdims=True)
    var = jnp.mean((y - mean) ** 2, axis=-1, keepdims=True)
    yn = (y - mean) / jnp.sqrt(var + LN_EPS) * ln_w + ln_b
    h = jax.nn.gelu(yn @ w1.T + b1, approximate=True)
    z = (h @ w2.T + b2) * gamma
    return jnp.transpose(z, (0, 2, 1)) + x_nct


def init_params(key, channels, intermediate, layer_scale_init_value=1e-6,
                kernel_size=KSIZE):
    ks = jax.random.split(key, 8)
    s = 0.05
    dw_w = jax.random.normal(ks[0], (channels, 1, kernel_size), jnp.float32) * s
    dw_b = jax.random.normal(ks[1], (channels,), jnp.float32) * s
    ln_w = 1.0 + jax.random.normal(ks[2], (channels,), jnp.float32) * s
    ln_b = jax.random.normal(ks[3], (channels,), jnp.float32) * s
    w1 = jax.random.normal(ks[4], (intermediate, channels), jnp.float32) * s
    b1 = jax.random.normal(ks[5], (intermediate,), jnp.float32) * s
    w2 = jax.random.normal(ks[6], (channels, intermediate), jnp.float32) * s
    b2 = jax.random.normal(ks[7], (channels,), jnp.float32) * s
    gamma = jnp.full((channels,), layer_scale_init_value, jnp.float32)
    return (dw_w, dw_b, ln_w, ln_b, w1, b1, w2, b2, gamma)


if __name__ == "__main__":
    # Small but TPU-friendly shapes: lane-dense C, multiple time tiles per
    # batch element (exercises halo + end-padding paths).  grid = (2, 2).
    B, C, T = 2, 128, 48
    INTERMEDIATE = 256
    TIME_TILE = 32

    key = jax.random.PRNGKey(0)
    k_x, k_p = jax.random.split(key)
    x = jax.random.normal(k_x, (B, C, T), jnp.float32)
    params = init_params(k_p, C, INTERMEDIATE, layer_scale_init_value=0.2)

    fn = jax.jit(functools.partial(convnext_block, time_tile=TIME_TILE))
    out = jax.block_until_ready(fn(x, params))

    ref = _reference(x, params)
    assert out.shape == (B, C, T)
    err = float(jnp.max(jnp.abs(out - ref)))
    # bf16 MXU operands -> small tolerance vs. the pure-f32 reference.
    assert err < 2e-2, err

    print("KERNEL_OK")
</pallas_src>

<mosaic_0001>
module attributes {stable_mosaic.version = 11 : i64} {
  func.func @_convnext_kernel(%arg0: i32, %arg1: i32, %arg2: memref<1x1x8x128xf32, #tpu.memory_space<vmem>>, %arg3: memref<1x32x128xf32, #tpu.memory_space<vmem>>, %arg4: memref<7x128xf32, #tpu.memory_space<vmem>>, %arg5: memref<1x128xf32, #tpu.memory_space<vmem>>, %arg6: memref<1x128xf32, #tpu.memory_space<vmem>>, %arg7: memref<1x128xf32, #tpu.memory_space<vmem>>, %arg8: memref<128x256xbf16, #tpu.memory_space<vmem>>, %arg9: memref<1x256xf32, #tpu.memory_space<vmem>>, %arg10: memref<256x128xbf16, #tpu.memory_space<vmem>>, %arg11: memref<1x128xf32, #tpu.memory_space<vmem>>, %arg12: memref<1x128xf32, #tpu.memory_space<vmem>>, %arg13: memref<1x32x128xf32, #tpu.memory_space<vmem>>) attributes {dimension_semantics = [#tpu.dimension_semantics<parallel>, #tpu.dimension_semantics<parallel>], iteration_bounds = array<i64: 2, 2>, scalar_prefetch = 0 : i64, scratch_operands = 0 : i64, tpu.core_type = #tpu.core_type<tc>, window_params = [{transform_indices = @transform_0, window_bounds = array<i64: 1, 1, 8, 128>}, {transform_indices = @transform_1, window_bounds = array<i64: 1, 32, 128>}, {pipeline_mode = #tpu.pipeline_mode<synchronous>, transform_indices = @transform_2, window_bounds = array<i64: 7, 128>}, {pipeline_mode = #tpu.pipeline_mode<synchronous>, transform_indices = @transform_3, window_bounds = array<i64: 1, 128>}, {pipeline_mode = #tpu.pipeline_mode<synchronous>, transform_indices = @transform_4, window_bounds = array<i64: 1, 128>}, {pipeline_mode = #tpu.pipeline_mode<synchronous>, transform_indices = @transform_5, window_bounds = array<i64: 1, 128>}, {pipeline_mode = #tpu.pipeline_mode<synchronous>, transform_indices = @transform_6, window_bounds = array<i64: 128, 256>}, {pipeline_mode = #tpu.pipeline_mode<synchronous>, transform_indices = @transform_7, window_bounds = array<i64: 1, 256>}, {pipeline_mode = #tpu.pipeline_mode<synchronous>, transform_indices = @transform_8, window_bounds = array<i64: 256, 128>}, {pipeline_mode = #tpu.pipeline_mode<synchronous>, transform_indices = @transform_9, window_bounds = array<i64: 1, 128>}, {pipeline_mode = #tpu.pipeline_mode<synchronous>, transform_indices = @transform_10, window_bounds = array<i64: 1, 128>}, {transform_indices = @transform_11, window_bounds = array<i64: 1, 32, 128>}]} {
    %c0 = arith.constant 0 : index
    %c0_0 = arith.constant 0 : index
    %c0_1 = arith.constant 0 : index
    %0 = vector.load %arg3[%c0, %c0_0, %c0_1] : memref<1x32x128xf32, #tpu.memory_space<vmem>>, vector<1x32x128xf32>
    %1 = vector.shape_cast %0 : vector<1x32x128xf32> to vector<32x128xf32>
    %c0_2 = arith.constant 0 : index
    %c0_3 = arith.constant 0 : index
    %c0_4 = arith.constant 0 : index
    %c0_5 = arith.constant 0 : index
    %2 = vector.load %arg2[%c0_2, %c0_3, %c0_4, %c0_5] : memref<1x1x8x128xf32, #tpu.memory_space<vmem>>, vector<1x1x8x128xf32>
    %3 = vector.shape_cast %2 : vector<1x1x8x128xf32> to vector<8x128xf32>
    %4 = tpu.concatenate %3, %1 in 0 : vector<8x128xf32>, vector<32x128xf32> -> vector<40x128xf32>
    %c0_6 = arith.constant 0 : index
    %c0_7 = arith.constant 0 : index
    %5 = vector.load %arg4[%c0_6, %c0_7] : memref<7x128xf32, #tpu.memory_space<vmem>>, vector<7x128xf32>
    %6 = vector.extract_strided_slice %5 {offsets = [6, 0], sizes = [1, 128], strides = [1, 1]} : vector<7x128xf32> to vector<1x128xf32>
    %7 = vector.shape_cast %6 : vector<1x128xf32> to vector<128xf32>
    %8 = vector.shape_cast %7 : vector<128xf32> to vector<1x128xf32>
    %9 = vector.broadcast %8 : vector<1x128xf32> to vector<32x128xf32>
    %10 = arith.mulf %1, %9 : vector<32x128xf32>
    %c38_i32 = arith.constant 38 : i32
    %11 = tpu.dynamic_rotate %4 by %c38_i32 dim 0 : vector<40x128xf32>, i32 -> vector<40x128xf32>
    %12 = vector.extract_strided_slice %11 {offsets = [0, 0], sizes = [32, 128], strides = [1, 1]} : vector<40x128xf32> to vector<32x128xf32>
    %13 = vector.extract_strided_slice %5 {offsets = [0, 0], sizes = [1, 128], strides = [1, 1]} : vector<7x128xf32> to vector<1x128xf32>
    %14 = vector.shape_cast %13 : vector<1x128xf32> to vector<128xf32>
    %15 = vector.shape_cast %14 : vector<128xf32> to vector<1x128xf32>
    %16 = vector.broadcast %15 : vector<1x128xf32> to vector<32x128xf32>
    %17 = arith.mulf %12, %16 : vector<32x128xf32>
    %18 = arith.addf %10, %17 : vector<32x128xf32>
    %c37_i32 = arith.constant 37 : i32
    %19 = tpu.dynamic_rotate %4 by %c37_i32 dim 0 : vector<40x128xf32>, i32 -> vector<40x128xf32>
    %20 = vector.extract_strided_slice %19 {offsets = [0, 0], sizes = [32, 128], strides = [1, 1]} : vector<40x128xf32> to vector<32x128xf32>
    %21 = vector.extract_strided_slice %5 {offsets = [1, 0], sizes = [1, 128], strides = [1, 1]} : vector<7x128xf32> to vector<1x128xf32>
    %22 = vector.shape_cast %21 : vector<1x128xf32> to vector<128xf32>
    %23 = vector.shape_cast %22 : vector<128xf32> to vector<1x128xf32>
    %24 = vector.broadcast %23 : vector<1x128xf32> to vector<32x128xf32>
    %25 = arith.mulf %20, %24 : vector<32x128xf32>
    %26 = arith.addf %18, %25 : vector<32x128xf32>
    %c36_i32 = arith.constant 36 : i32
    %27 = tpu.dynamic_rotate %4 by %c36_i32 dim 0 : vector<40x128xf32>, i32 -> vector<40x128xf32>
    %28 = vector.extract_strided_slice %27 {offsets = [0, 0], sizes = [32, 128], strides = [1, 1]} : vector<40x128xf32> to vector<32x128xf32>
    %29 = vector.extract_strided_slice %5 {offsets = [2, 0], sizes = [1, 128], strides = [1, 1]} : vector<7x128xf32> to vector<1x128xf32>
    %30 = vector.shape_cast %29 : vector<1x128xf32> to vector<128xf32>
    %31 = vector.shape_cast %30 : vector<128xf32> to vector<1x128xf32>
    %32 = vector.broadcast %31 : vector<1x128xf32> to vector<32x128xf32>
    %33 = arith.mulf %28, %32 : vector<32x128xf32>
    %34 = arith.addf %26, %33 : vector<32x128xf32>
    %c35_i32 = arith.constant 35 : i32
    %35 = tpu.dynamic_rotate %4 by %c35_i32 dim 0 : vector<40x128xf32>, i32 -> vector<40x128xf32>
    %36 = vector.extract_strided_slice %35 {offsets = [0, 0], sizes = [32, 128], strides = [1, 1]} : vector<40x128xf32> to vector<32x128xf32>
    %37 = vector.extract_strided_slice %5 {offsets = [3, 0], sizes = [1, 128], strides = [1, 1]} : vector<7x128xf32> to vector<1x128xf32>
    %38 = vector.shape_cast %37 : vector<1x128xf32> to vector<128xf32>
    %39 = vector.shape_cast %38 : vector<128xf32> to vector<1x128xf32>
    %40 = vector.broadcast %39 : vector<1x128xf32> to vector<32x128xf32>
    %41 = arith.mulf %36, %40 : vector<32x128xf32>
    %42 = arith.addf %34, %41 : vector<32x128xf32>
    %c34_i32 = arith.constant 34 : i32
    %43 = tpu.dynamic_rotate %4 by %c34_i32 dim 0 : vector<40x128xf32>, i32 -> vector<40x128xf32>
    %44 = vector.extract_strided_slice %43 {offsets = [0, 0], sizes = [32, 128], strides = [1, 1]} : vector<40x128xf32> to vector<32x128xf32>
    %45 = vector.extract_strided_slice %5 {offsets = [4, 0], sizes = [1, 128], strides = [1, 1]} : vector<7x128xf32> to vector<1x128xf32>
    %46 = vector.shape_cast %45 : vector<1x128xf32> to vector<128xf32>
    %47 = vector.shape_cast %46 : vector<128xf32> to vector<1x128xf32>
    %48 = vector.broadcast %47 : vector<1x128xf32> to vector<32x128xf32>
    %49 = arith.mulf %44, %48 : vector<32x128xf32>
    %50 = arith.addf %42, %49 : vector<32x128xf32>
    %c33_i32 = arith.constant 33 : i32
    %51 = tpu.dynamic_rotate %4 by %c33_i32 dim 0 : vector<40x128xf32>, i32 -> vector<40x128xf32>
    %52 = vector.extract_strided_slice %51 {offsets = [0, 0], sizes = [32, 128], strides = [1, 1]} : vector<40x128xf32> to vector<32x128xf32>
    %53 = vector.extract_strided_slice %5 {offsets = [5, 0], sizes = [1, 128], strides = [1, 1]} : vector<7x128xf32> to vector<1x128xf32>
    %54 = vector.shape_cast %53 : vector<1x128xf32> to vector<128xf32>
    %55 = vector.shape_cast %54 : vector<128xf32> to vector<1x128xf32>
    %56 = vector.broadcast %55 : vector<1x128xf32> to vector<32x128xf32>
    %57 = arith.mulf %52, %56 : vector<32x128xf32>
    %58 = arith.addf %50, %57 : vector<32x128xf32>
    %c0_8 = arith.constant 0 : index
    %c0_9 = arith.constant 0 : index
    %59 = vector.load %arg5[%c0_8, %c0_9] : memref<1x128xf32, #tpu.memory_space<vmem>>, vector<1x128xf32>
    %60 = vector.broadcast %59 : vector<1x128xf32> to vector<32x128xf32>
    %61 = arith.addf %58, %60 : vector<32x128xf32>
    %cst = arith.constant dense<0.000000e+00> : vector<32xf32>
    %62 = vector.multi_reduction <add>, %61, %cst [1] : vector<32x128xf32> to vector<32xf32>
    %63 = vector.shape_cast %62 : vector<32xf32> to vector<32x1xf32>
    %cst_10 = arith.constant 7.812500e-03 : f32
    %64 = vector.broadcast %cst_10 : f32 to vector<32x1xf32>
    %65 = arith.mulf %63, %64 : vector<32x1xf32>
    %66 = arith.mulf %61, %61 : vector<32x128xf32>
    %cst_11 = arith.constant dense<0.000000e+00> : vector<32xf32>
    %67 = vector.multi_reduction <add>, %66, %cst_11 [1] : vector<32x128xf32> to vector<32xf32>
    %68 = vector.shape_cast %67 : vector<32xf32> to vector<32x1xf32>
    %cst_12 = arith.constant 7.812500e-03 : f32
    %69 = vector.broadcast %cst_12 : f32 to vector<32x1xf32>
    %70 = arith.mulf %68, %69 : vector<32x1xf32>
    %71 = arith.mulf %65, %65 : vector<32x1xf32>
    %72 = arith.subf %70, %71 : vector<32x1xf32>
    %73 = vector.broadcast %65 : vector<32x1xf32> to vector<32x128xf32>
    %74 = arith.subf %61, %73 : vector<32x128xf32>
    %cst_13 = arith.constant 9.99999974E-6 : f32
    %75 = vector.broadcast %cst_13 : f32 to vector<32x1xf32>
    %76 = arith.addf %72, %75 : vector<32x1xf32>
    %77 = math.rsqrt %76 : vector<32x1xf32>
    %78 = vector.broadcast %77 : vector<32x1xf32> to vector<32x128xf32>
    %79 = arith.mulf %74, %78 : vector<32x128xf32>
    %c0_14 = arith.constant 0 : index
    %c0_15 = arith.constant 0 : index
    %80 = vector.load %arg6[%c0_14, %c0_15] : memref<1x128xf32, #tpu.memory_space<vmem>>, vector<1x128xf32>
    %81 = vector.broadcast %80 : vector<1x128xf32> to vector<32x128xf32>
    %82 = arith.mulf %79, %81 : vector<32x128xf32>
    %c0_16 = arith.constant 0 : index
    %c0_17 = arith.constant 0 : index
    %83 = vector.load %arg7[%c0_16, %c0_17] : memref<1x128xf32, #tpu.memory_space<vmem>>, vector<1x128xf32>
    %84 = vector.broadcast %83 : vector<1x128xf32> to vector<32x128xf32>
    %85 = arith.addf %82, %84 : vector<32x128xf32>
    %86 = arith.truncf %85 : vector<32x128xf32> to vector<32x128xbf16>
    %c0_18 = arith.constant 0 : index
    %c0_19 = arith.constant 0 : index
    %87 = vector.load %arg8[%c0_18, %c0_19] : memref<128x256xbf16, #tpu.memory_space<vmem>>, vector<128x256xbf16>
    %cst_20 = arith.constant dense<0.000000e+00> : vector<32x256xf32>
    %88 = tpu.matmul %86, %87, %cst_20 {dimension_numbers = #tpu.dot_dimension_numbers<[1], [0], [0], [1], [0, 0, 1, 1], [], []>} : vector<32x128xbf16>, vector<128x256xbf16>, vector<32x256xf32> -> vector<32x256xf32>
    %c0_21 = arith.constant 0 : index
    %c0_22 = arith.constant 0 : index
    %89 = vector.load %arg9[%c0_21, %c0_22] : memref<1x256xf32, #tpu.memory_space<vmem>>, vector<1x256xf32>
    %90 = vector.broadcast %89 : vector<1x256xf32> to vector<32x256xf32>
    %91 = arith.addf %88, %90 : vector<32x256xf32>
    %92 = arith.mulf %91, %91 : vector<32x256xf32>
    %93 = arith.mulf %91, %92 : vector<32x256xf32>
    %cst_23 = arith.constant 4.471500e-02 : f32
    %94 = vector.broadcast %cst_23 : f32 to vector<32x256xf32>
    %95 = arith.mulf %94, %93 : vector<32x256xf32>
    %96 = arith.addf %91, %95 : vector<32x256xf32>
    %cst_24 = arith.constant 0.797884583 : f32
    %97 = vector.broadcast %cst_24 : f32 to vector<32x256xf32>
    %98 = arith.mulf %97, %96 : vector<32x256xf32>
    %99 = math.tanh %98 : vector<32x256xf32>
    %cst_25 = arith.constant 1.000000e+00 : f32
    %100 = vector.broadcast %cst_25 : f32 to vector<32x256xf32>
    %101 = arith.addf %100, %99 : vector<32x256xf32>
    %cst_26 = arith.constant 5.000000e-01 : f32
    %102 = vector.broadcast %cst_26 : f32 to vector<32x256xf32>
    %103 = arith.mulf %102, %101 : vector<32x256xf32>
    %104 = arith.mulf %91, %103 : vector<32x256xf32>
    %105 = arith.truncf %104 : vector<32x256xf32> to vector<32x256xbf16>
    %c0_27 = arith.constant 0 : index
    %c0_28 = arith.constant 0 : index
    %106 = vector.load %arg10[%c0_27, %c0_28] : memref<256x128xbf16, #tpu.memory_space<vmem>>, vector<256x128xbf16>
    %cst_29 = arith.constant dense<0.000000e+00> : vector<32x128xf32>
    %107 = tpu.matmul %105, %106, %cst_29 {dimension_numbers = #tpu.dot_dimension_numbers<[1], [0], [0], [1], [0, 0, 1, 1], [], []>} : vector<32x256xbf16>, vector<256x128xbf16>, vector<32x128xf32> -> vector<32x128xf32>
    %c0_30 = arith.constant 0 : index
    %c0_31 = arith.constant 0 : index
    %108 = vector.load %arg11[%c0_30, %c0_31] : memref<1x128xf32, #tpu.memory_space<vmem>>, vector<1x128xf32>
    %109 = vector.broadcast %108 : vector<1x128xf32> to vector<32x128xf32>
    %110 = arith.addf %107, %109 : vector<32x128xf32>
    %c0_32 = arith.constant 0 : index
    %c0_33 = arith.constant 0 : index
    %111 = vector.load %arg12[%c0_32, %c0_33] : memref<1x128xf32, #tpu.memory_space<vmem>>, vector<1x128xf32>
    %112 = vector.broadcast %111 : vector<1x128xf32> to vector<32x128xf32>
    %113 = arith.mulf %110, %112 : vector<32x128xf32>
    %114 = arith.addf %113, %1 : vector<32x128xf32>
    %c0_34 = arith.constant 0 : index
    %c0_35 = arith.constant 0 : index
    %c0_36 = arith.constant 0 : index
    %115 = vector.load %arg13[%c0_34, %c0_35, %c0_36] : memref<1x32x128xf32, #tpu.memory_space<vmem>>, vector<1x32x128xf32>
    %116 = vector.shape_cast %115 : vector<1x32x128xf32> to vector<32x128xf32>
    %117 = vector.shape_cast %114 : vector<32x128xf32> to vector<1x32x128xf32>
    tpu.vector_store %arg13[%c0_34, %c0_35, %c0_36], %117 {strides = array<i32>} : memref<1x32x128xf32, #tpu.memory_space<vmem>>, vector<1x32x128xf32>,
    return
  }
  func.func @transform_0(%arg0: i32, %arg1: i32) -> (i32, i32, i32, i32) {
    %c0_i32 = arith.constant 0 : i32
    %c0_i32_0 = arith.constant 0 : i32
    %c0_i32_1 = arith.constant 0 : i32
    return %arg0, %arg1, %c0_i32, %c0_i32_0 : i32, i32, i32, i32
  }
  func.func @transform_1(%arg0: i32, %arg1: i32) -> (i32, i32, i32) {
    %c0_i32 = arith.constant 0 : i32
    %c0_i32_0 = arith.constant 0 : i32
    return %arg0, %arg1, %c0_i32 : i32, i32, i32
  }
  func.func @transform_2(%arg0: i32, %arg1: i32) -> (i32, i32) {
    %c0_i32 = arith.constant 0 : i32
    %c0_i32_0 = arith.constant 0 : i32
    %c0_i32_1 = arith.constant 0 : i32
    return %c0_i32, %c0_i32_0 : i32, i32
  }
  func.func @transform_3(%arg0: i32, %arg1: i32) -> (i32, i32) {
    %c0_i32 = arith.constant 0 : i32
    %c0_i32_0 = arith.constant 0 : i32
    %c0_i32_1 = arith.constant 0 : i32
    return %c0_i32, %c0_i32_0 : i32, i32
  }
  func.func @transform_4(%arg0: i32, %arg1: i32) -> (i32, i32) {
    %c0_i32 = arith.constant 0 : i32
    %c0_i32_0 = arith.constant 0 : i32
    %c0_i32_1 = arith.constant 0 : i32
    return %c0_i32, %c0_i32_0 : i32, i32
  }
  func.func @transform_5(%arg0: i32, %arg1: i32) -> (i32, i32) {
    %c0_i32 = arith.constant 0 : i32
    %c0_i32_0 = arith.constant 0 : i32
    %c0_i32_1 = arith.constant 0 : i32
    return %c0_i32, %c0_i32_0 : i32, i32
  }
  func.func @transform_6(%arg0: i32, %arg1: i32) -> (i32, i32) {
    %c0_i32 = arith.constant 0 : i32
    %c0_i32_0 = arith.constant 0 : i32
    %c0_i32_1 = arith.constant 0 : i32
    return %c0_i32, %c0_i32_0 : i32, i32
  }
  func.func @transform_7(%arg0: i32, %arg1: i32) -> (i32, i32) {
    %c0_i32 = arith.constant 0 : i32
    %c0_i32_0 = arith.constant 0 : i32
    %c0_i32_1 = arith.constant 0 : i32
    return %c0_i32, %c0_i32_0 : i32, i32
  }
  func.func @transform_8(%arg0: i32, %arg1: i32) -> (i32, i32) {
    %c0_i32 = arith.constant 0 : i32
    %c0_i32_0 = arith.constant 0 : i32
    %c0_i32_1 = arith.constant 0 : i32
    return %c0_i32, %c0_i32_0 : i32, i32
  }
  func.func @transform_9(%arg0: i32, %arg1: i32) -> (i32, i32) {
    %c0_i32 = arith.constant 0 : i32
    %c0_i32_0 = arith.constant 0 : i32
    %c0_i32_1 = arith.constant 0 : i32
    return %c0_i32, %c0_i32_0 : i32, i32
  }
  func.func @transform_10(%arg0: i32, %arg1: i32) -> (i32, i32) {
    %c0_i32 = arith.constant 0 : i32
    %c0_i32_0 = arith.constant 0 : i32
    %c0_i32_1 = arith.constant 0 : i32
    return %c0_i32, %c0_i32_0 : i32, i32
  }
  func.func @transform_11(%arg0: i32, %arg1: i32) -> (i32, i32, i32) {
    %c0_i32 = arith.constant 0 : i32
    %c0_i32_0 = arith.constant 0 : i32
    return %arg0, %arg1, %c0_i32 : i32, i32, i32
  }
}

</mosaic_0001>

<bundles_post_ra>
// kernel: convnext_block.1
= control target key start
LH: loop header
LB: loop body
LE: loop exit
PB: predicated region body
PF: predicated region fallthrough
CT: control target
= control target key end

     0   :  { %s1527_s17 = smov 0   ;;  %s1529_s18 = smov 0   ;;  %s1934_s0 = inlined_call_operand.vmem [shape: f32[2,2,8,128], index: 0, kind: input, shape index: {}]   ;;  %s1935_s1 = inlined_call_operand.vmem [shape: f32[2,64,128], index: 1, kind: input, shape index: {}]   ;;  %s1936_s2 = inlined_call_operand.vmem [shape: f32[7,128], index: 2, kind: input, shape index: {}]   ;;  %s1937_s3 = inlined_call_operand.vmem [shape: f32[1,128], index: 3, kind: input, shape index: {}]   ;;  %s1938_s4 = inlined_call_operand.vmem [shape: f32[1,128], index: 4, kind: input, shape index: {}]   ;;  %s1939_s5 = inlined_call_operand.vmem [shape: f32[1,128], index: 5, kind: input, shape index: {}]   ;;  %s1940_s6 = inlined_call_operand.vmem [shape: bf16[128,256], index: 6, kind: input, shape index: {}]   ;;  %s1941_s7 = inlined_call_operand.vmem [shape: f32[1,256], index: 7, kind: input, shape index: {}]   ;;  %s1942_s8 = inlined_call_operand.vmem [shape: bf16[256,128], index: 8, kind: input, shape index: {}]   ;;  %s1943_s9 = inlined_call_operand.vmem [shape: f32[1,128], index: 9, kind: input, shape index: {}]   ;;  %s1944_s10 = inlined_call_operand.vmem [shape: f32[1,128], index: 10, kind: input, shape index: {}]   ;;  %s1945_s11 = inlined_call_operand.vmem [shape: f32[2,64,128], index: 11, kind: output, shape index: {}]  }
   0x1   :  { %s1531_s19 = smov 0   ;;  %s1533_s20 = smov 0  }
   0x2   :  { %s1535_s21 = smov 0  }
   0x3 LB: > { %s30_s22 = sadd.s32 1, %s1456_s19  ;;  %s33_s23 = sadd.s32 1, %s1460_s20  ;;  %s1464_s21 = sphi %s1535_s21, %s21_s21   ;;  %s1460_s20 = sphi %s1533_s20, %s1950_s20   ;;  %s1456_s19 = sphi %s1531_s19, %s1949_s19   ;;  %s1452_s18 = sphi %s1529_s18, %s1948_s18   ;;  %s1448_s17 = sphi %s1527_s17, %s1947_s17  }
   0x4   : > { %p31_p0 = scmp.ge.s32.totalorder %s30_s22, 2  ;;  %p1245_p1 = scmp.ge.s32.totalorder %s1464_s21, 1 }
   0x5   : > { %p373_p2 = scmp.lt.s32.totalorder %s1464_s21, 5 }
   0x6   : > { %s1952_s22 = smov (%p31_p0, %s30_s22), 0  ;;  %s1954_s23 = smov (!%p31_p0, %s33_s23), %s1460_s20 }
   0x7   : > { %p374_p3 = pnand %p1245_p1, %p373_p2  ;;  %p35_p4 = scmp.ge.s32.totalorder %s1954_s23, 2 }
   0x8   : > { %p429_p5 = scmp.lt.s32.totalorder (!%p374_p3), %s1452_s18, 1  ;;  %p431_p6 = scmp.lt.s32.totalorder (!%p374_p3), %s1448_s17, 1 }
   0x9   : > { %s1956_s23 = smov (%p35_p4, %s1954_s23), 0  ;;  %377 = sbr.rel (%p374_p3) target bundleno = 673 (0x2a1), region = 64 }
   0xa   : > { %s1248_s24 = sshll.u32 (!%p374_p3), %s1448_s17, 2 }
   0xb   : > { %p1564_p7 = scmp.lt.s32.totalorder (!%p374_p3), %s1248_s24, 7 }
   0xe   : > { %v464_v0 = vlaneseq  ;;  %s1958_s18 = smov (!%p429_p5, %s1452_s18), 1  ;;  %s1960_s17 = smov (!%p431_p6, %s1448_s17), 1  ;;  %v463_v2 = vld [vmem:[%s1936_s2] sm:$0x7f] }
   0xf   : > { %s1246_s25 = sshll.u32 %s1958_s18, 1  ;;  %s1249_s12 = sshll.u32 %s1958_s18, 3 }
  0x10   : > { %v1561_v1 = vshrl.u32 %v464_v0, 7  ;;  %s434_s27 = sadd.s32 %s1246_s25, %s1960_s17  ;;  %s1962_s24 = smov (!%p1564_p7, %s1248_s24), 7 }
  0x11   : > { %s1247_s30 = sshll.u32 %s434_s27, 3  ;;  %s1589_s16 = sadd.s32 %s1249_s12, %s1962_s24 }
  0x12   : > { %v466_v3 = vsub.s32 6, %v1561_v1  ;;  %vm479_vm0 = vcmp.lt.s32.totalorder %v1561_v1, 6  ;;  %v486_v4 = vsub.s32 0, %v1561_v1  ;;  %vm501_vm1 = vcmp.lt.s32.totalorder %v1561_v1, 5  ;;  %s436_s15 = scalar_lea.vmem %s1934_s0, %s1247_s30  ;;  %s1250_s17 = sshll.u32 %s1589_s16, 3 }
  0x13   : > { %v508_v5 = vsub.s32 1, %v1561_v1  ;;  %vm523_vm2 = vcmp.lt.s32.totalorder %v1561_v1, 4  ;;  %v530_v6 = vsub.s32 2, %v1561_v1  ;;  %vm545_vm3 = vcmp.lt.s32.totalorder %v1561_v1, 3  ;;  %v462_v7 = vld [vmem:[%s436_s15] sm:$0xff]  ;;  %s1599_s26 = scalar_lea.vmem %s1935_s1, %s1250_s17  ;;  %s455_s13 = scalar_lea.vmem %s1945_s11, %s1250_s17 }
  0x14   : > { %v552_v8 = vsub.s32 3, %v1561_v1  ;;  %vm567_vm4 = vcmp.lt.s32.totalorder %v1561_v1, 2  ;;  %v472_v9 = vrot.slane %v462_v7, 2  ;;  %v574_v10 = vsub.s32 4, %v1561_v1  ;;  %v1614_v20 = vld [vmem:[%s1599_s26] sm:$0xff]  ;;  %v1621_v25 = vld [vmem:[%s1599_s26 + $0x8] sm:$0xff] }
  0x15   : > { %vm589_vm5 = vcmp.lt.s32.totalorder %v1561_v1, 1  ;;  %v596_v11 = vsub.s32 5, %v1561_v1  ;;  %v1591_v12 = vrot.slane %v463_v2, %v466_v3  ;;  %v496_v13 = vrot.slane %v462_v7, 3  ;;  %v1653_v46 = vld [vmem:[%s1599_s26 + $0x10] sm:$0xff] }
  0x16   : > { %v518_v14 = vrot.slane %v462_v7, 4  ;;  %v540_v15 = vrot.slane %v462_v7, 5  ;;  %v1603_v16 = vrot.slane %v463_v2, %v486_v4  ;;  %v1607_v17 = vrot.slane %v463_v2, %v508_v5 }
  0x17   : > { %v1609_v18 = vrot.slane %v463_v2, %v530_v6  ;;  %v1611_v19 = vrot.slane %v463_v2, %v552_v8  ;;  %v562_v21 = vrot.slane %v462_v7, 6  ;;  %v1616_v22 = vrot.slane %v463_v2, %v574_v10 }
  0x18   : > { %v584_v23 = vrot.slane %v462_v7, 7  ;;  %v1618_v24 = vrot.slane %v463_v2, %v596_v11  ;;  %v468_v26 = vmul.f32 %v1591_v12, %v1614_v20  ;;  %v473_v27 = vrot.slane %v1614_v20, 2 }
  0x19   : > { %v497_v28 = vrot.slane %v1614_v20, 3  ;;  %v519_v29 = vrot.slane %v1614_v20, 4  ;;  %v541_v30 = vrot.slane %v1614_v20, 5  ;;  %v563_v31 = vrot.slane %v1614_v20, 6 }
  0x1a   : > { %v585_v32 = vrot.slane %v1614_v20, 7  ;;  %v469_v33 = vmul.f32 %v1591_v12, %v1621_v25  ;;  %v483_v34 = vsel %vm479_vm0, %v472_v9, %v473_v27  ;;  %v474_v37 = vrot.slane %v1621_v25, 2 }
  0x1b   : > { %v505_v35 = vsel %vm501_vm1, %v496_v13, %v497_v28  ;;  %v527_v36 = vsel %vm523_vm2, %v518_v14, %v519_v29  ;;  %v488_v38 = vmul.f32 %v1603_v16, %v483_v34  ;;  %v549_v41 = vsel %vm545_vm3, %v540_v15, %v541_v30 }
  0x1c   : > { %v510_v39 = vmul.f32 %v1607_v17, %v505_v35  ;;  %v532_v40 = vmul.f32 %v1609_v18, %v527_v36  ;;  %v554_v42 = vmul.f32 %v1611_v19, %v549_v41  ;;  %v571_v43 = vsel %vm567_vm4, %v562_v21, %v563_v31 }
  0x1d   : > { %v593_v44 = vsel %vm589_vm5, %v584_v23, %v585_v32  ;;  %v482_v45 = vsel %vm479_vm0, %v473_v27, %v474_v37  ;;  %v492_v47 = vadd.f32 %v488_v38, %v468_v26  ;;  %v576_v48 = vmul.f32 %v1616_v22, %v571_v43 }
  0x1e   : > { %v598_v49 = vmul.f32 %v1618_v24, %v593_v44  ;;  %v489_v50 = vmul.f32 %v1603_v16, %v482_v45  ;;  %v498_v51 = vrot.slane %v1621_v25, 3  ;;  %v520_v52 = vrot.slane %v1621_v25, 4 }
  0x1f   : > { %v542_v53 = vrot.slane %v1621_v25, 5  ;;  %v564_v54 = vrot.slane %v1621_v25, 6  ;;  %v514_v55 = vadd.f32 %v510_v39, %v492_v47  ;;  %v586_v57 = vrot.slane %v1621_v25, 7 }
  0x20   : > { %v493_v56 = vadd.f32 %v489_v50, %v469_v33  ;;  %v470_v58 = vmul.f32 %v1591_v12, %v1653_v46  ;;  %v504_v59 = vsel %vm501_vm1, %v497_v28, %v498_v51  ;;  %v526_v60 = vsel %vm523_vm2, %v519_v29, %v520_v52 }
  0x21   : > { %v548_v61 = vsel %vm545_vm3, %v541_v30, %v542_v53  ;;  %v570_v62 = vsel %vm567_vm4, %v563_v31, %v564_v54  ;;  %v536_v63 = vadd.f32 %v532_v40, %v514_v55  ;;  %v511_v0 = vmul.f32 %v1607_v17, %v504_v59  ;;  %v1254_v31 = vld [vmem:[%s1937_s3] ss:$0 sm:$0xff]  ;;  %v1703_v40 = vld [vmem:[%s1599_s26 + $0x18] sm:$0xff] }
  0x22   : > { %v533_v2 = vmul.f32 %v1609_v18, %v526_v60  ;;  %v555_v3 = vmul.f32 %v1611_v19, %v548_v61  ;;  %v577_v6 = vmul.f32 %v1616_v22, %v570_v62  ;;  %v592_v7 = vsel %vm589_vm5, %v585_v32, %v586_v57 }
  0x23   : > { %v475_v8 = vrot.slane %v1653_v46, 2  ;;  %v499_v9 = vrot.slane %v1653_v46, 3  ;;  %v558_v10 = vadd.f32 %v554_v42, %v536_v63  ;;  %v515_v11 = vadd.f32 %v511_v0, %v493_v56 }
  0x24   : > { %v599_v13 = vmul.f32 %v1618_v24, %v592_v7  ;;  %v521_v14 = vrot.slane %v1653_v46, 4  ;;  %v543_v23 = vrot.slane %v1653_v46, 5  ;;  %v565_v26 = vrot.slane %v1653_v46, 6 }
  0x25   : > { %v481_v15 = vsel %vm479_vm0, %v474_v37, %v475_v8  ;;  %v503_v21 = vsel %vm501_vm1, %v498_v51, %v499_v9  ;;  %v580_v27 = vadd.f32 %v576_v48, %v558_v10  ;;  %v537_v28 = vadd.f32 %v533_v2, %v515_v11 }
  0x26   : > { %v490_v29 = vmul.f32 %v1603_v16, %v481_v15  ;;  %v512_v30 = vmul.f32 %v1607_v17, %v503_v21  ;;  %v525_v32 = vsel %vm523_vm2, %v520_v52, %v521_v14  ;;  %v547_v33 = vsel %vm545_vm3, %v542_v53, %v543_v23 }
  0x27   : > { %v569_v34 = vsel %vm567_vm4, %v564_v54, %v565_v26  ;;  %v587_v35 = vrot.slane %v1653_v46, 7  ;;  %v602_v36 = vadd.f32 %v598_v49, %v580_v27  ;;  %v559_v37 = vadd.f32 %v555_v3, %v537_v28 }
  0x28   : > { %v494_v38 = vadd.f32 %v490_v29, %v470_v58  ;;  %v534_v39 = vmul.f32 %v1609_v18, %v525_v32  ;;  %v556_v41 = vmul.f32 %v1611_v19, %v547_v33  ;;  %v578_v42 = vmul.f32 %v1616_v22, %v569_v34  ;;  %v1365_v29 = vld [vmem:[%s1940_s6 + $0x64] ss:$8 sps:$4 sm:$0xff]   ;;  %v1370_v32 = vld [vmem:[%s1940_s6 + $0x50] ss:$8 sps:$4 sm:$0xff]   ;;  %v1373_v34 = vld [vmem:[%s1940_s6 + $0x40] ss:$8 sps:$4 sm:$0xff]  }
  0x29   : > { %v591_v43 = vsel %vm589_vm5, %v586_v57, %v587_v35  ;;  %v1709_v44 = vadd.f32 %v1254_v31, %v602_v36  ;;  %v581_v45 = vadd.f32 %v577_v6, %v559_v37  ;;  %v471_v48 = vmul.f32 %v1591_v12, %v1703_v40  ;;  %v1371_v33 = vld [vmem:[%s1940_s6 + $0x44] ss:$8 sps:$4 sm:$0xff]   ;;  %v1376_v36 = vld [vmem:[%s1940_s6 + $0x30] ss:$8 sps:$4 sm:$0xff]  }
  0x2a   : > { %v516_v47 = vadd.f32 %v512_v30, %v494_v38  ;;  %v476_v49 = vrot.slane %v1703_v40, 2  ;;  %v500_v50 = vrot.slane %v1703_v40, 3  ;;  %v522_v51 = vrot.slane %v1703_v40, 4  ;;  %v1367_v30 = vld [vmem:[%s1940_s6 + $0x60] ss:$8 sps:$4 sm:$0xff]  }
  0x2b   : > { %v544_v52 = vrot.slane %v1703_v40, 5  ;;  %617 = vadd.xlane.f32.xlu0 %v1709_v44  ;;  %v629_v53 = vmul.f32 %v1709_v44, %v1709_v44  ;;  %v603_v54 = vadd.f32 %v599_v13, %v581_v45  ;;  %v600_v56 = vmul.f32 %v1618_v24, %v591_v43  ;;  %v1377_v37 = vld [vmem:[%s1940_s6 + $0x24] ss:$8 sps:$4 sm:$0xff]   ;;  %v1379_v38 = vld [vmem:[%s1940_s6 + $0x20] ss:$8 sps:$4 sm:$0xff]  }
  0x2c   : > { %v538_v55 = vadd.f32 %v534_v39, %v516_v47  ;;  %v480_v12 = vsel %vm479_vm0, %v475_v8, %v476_v49  ;;  %v502_v57 = vsel %vm501_vm1, %v499_v9, %v500_v50  ;;  %v524_v58 = vsel %vm523_vm2, %v521_v14, %v522_v51  ;;  %v1380_v39 = vld [vmem:[%s1940_s6 + $0x14] ss:$8 sps:$4 sm:$0xff]   ;;  %v1383_v43 = vld [vmem:[%s1940_s6 + $0x4] ss:$8 sps:$4 sm:$0xff]   ;;  %v1385_v45 = vld [vmem:[%s1940_s6] ss:$8 sps:$4 sm:$0xff]  }
  0x2d   : > { %v566_v59 = vrot.slane %v1703_v40, 6  ;;  %633 = vadd.xlane.f32.xlu1 %v629_v53  ;;  %v1728_v60 = vadd.f32 %v1254_v31, %v603_v54  ;;  %v491_v62 = vmul.f32 %v1603_v16, %v480_v12  ;;  %v513_v63 = vmul.f32 %v1607_v17, %v502_v57 }
  0x2e   : > { %v560_v61 = vadd.f32 %v556_v41, %v538_v55  ;;  %v546_v0 = vsel %vm545_vm3, %v543_v23, %v544_v52  ;;  %v588_v2 = vrot.slane %v1703_v40, 7  ;;  %v535_v8 = vmul.f32 %v1609_v18, %v524_v58  ;;  %v1382_v41 = vld [vmem:[%s1940_s6 + $0x10] ss:$8 sps:$4 sm:$0xff]  }
  0x2f   : > { %619 = vadd.xlane.f32.xlu0 %v1728_v60  ;;  %v630_v3 = vmul.f32 %v1728_v60, %v1728_v60  ;;  %v495_v7 = vadd.f32 %v491_v62, %v471_v48  ;;  %v568_v9 = vsel %vm567_vm4, %v565_v26, %v566_v59  ;;  %v557_v10 = vmul.f32 %v1611_v19, %v546_v0 }
  0x30   : > { %v582_v6 = vadd.f32 %v578_v42, %v560_v61  ;;  %v590_v11 = vsel %vm589_vm5, %v587_v35, %v588_v2  ;;  %v579_v15 = vmul.f32 %v1616_v22, %v568_v9  ;;  %v1362_v22 = vld [vmem:[%s1940_s6 + $0x74] ss:$8 sps:$4 sm:$0xff]   ;;  %v1466_v42 = vmov 0  }
  0x31   : > { %635 = vadd.xlane.f32.xlu1 %v630_v3  ;;  %v517_v17 = vadd.f32 %v513_v63, %v495_v7  ;;  %v601_v18 = vmul.f32 %v1618_v24, %v590_v11  ;;  %v1364_v24 = vld [vmem:[%s1940_s6 + $0x70] ss:$8 sps:$4 sm:$0xff]   ;;  %801 = vmatprep.subr.bf16.mxu0 %v1362_v22  ;;  %v1374_v35 = vld [vmem:[%s1940_s6 + $0x34] ss:$8 sps:$4 sm:$0xff]  }
  0x32   : > { %v604_v16 = vadd.f32 %v600_v56, %v582_v6  ;;  %802 = vmatpush1.bf16.msra.mxu0 %v1364_v24  ;;  %833 = vmatprep.mubr.bf16.mxu0 %v1466_v42 }
  0x33   : > { %v539_v14 = vadd.f32 %v535_v8, %v517_v17  ;;  %803 = vmatprep.subr.bf16.mxu0 %v1365_v29 }
  0x34   : > { %v1744_v13 = vadd.f32 %v1254_v31, %v604_v16 }
  0x35   : > { %v561_v21 = vadd.f32 %v557_v10, %v539_v14 }
  0x36   : > { %621 = vadd.xlane.f32.xlu0 %v1744_v13  ;;  %v631_v23 = vmul.f32 %v1744_v13, %v1744_v13  ;;  %804 = vmatpush1.bf16.msra.mxu0 %v1367_v30 }
  0x37   : > { %v583_v26 = vadd.f32 %v579_v15, %v561_v21  ;;  %v1255_v15 = vld [vmem:[%s1938_s4] ss:$0 sm:$0xff] }
  0x39   : > { %v605_v27 = vadd.f32 %v601_v18, %v583_v26 }
  0x3a   : > { %637 = vadd.xlane.f32.xlu0 %v631_v23 }
  0x3b   : > { %v1751_v19 = vadd.f32 %v1254_v31, %v605_v27  ;;  %v1368_v31 = vld [vmem:[%s1940_s6 + $0x54] ss:$8 sps:$4 sm:$0xff]  }
  0x3c   : > { %805 = vmatprep.subr.bf16.mxu0 %v1368_v31 }
  0x3d   : > { %623 = vadd.xlane.f32.xlu1 %v1751_v19  ;;  %v632_v28 = vmul.f32 %v1751_v19, %v1751_v19  ;;  %806 = vmatpush1.bf16.msra.mxu0 %v1370_v32 }
  0x3e   : > { %807 = vmatprep.subr.bf16.mxu0 %v1371_v33 }
  0x41   : > { %639 = vadd.xlane.f32.xlu1 %v632_v28  ;;  %808 = vmatpush1.bf16.msra.mxu0 %v1373_v34 }
  0x42   : > { %809 = vmatprep.subr.bf16.mxu0 %v1374_v35 }
  0x45   : > { %810 = vmatpush1.bf16.msra.mxu0 %v1376_v36 }
  0x46   : > { %811 = vmatprep.subr.bf16.mxu0 %v1377_v37 }
  0x49   : > { %812 = vmatpush1.bf16.msra.mxu0 %v1379_v38 }
  0x4a   : > { %813 = vmatprep.subr.bf16.mxu0 %v1380_v39 }
  0x4d   : > { %814 = vmatpush1.bf16.msra.mxu0 %v1382_v41 }
  0x4e   : > { %815 = vmatprep.subr.bf16.mxu0 %v1383_v43  ;;  %v1386_v43 = vld [vmem:[%s1942_s8 + $0x78] sm:$0xff]  }
  0x4f   : > { %1293 = vmatprep.subr.bf16.mxu1 %v1386_v43 }
  0x51   : > { %816 = vmatpush1.bf16.msra.mxu0 %v1385_v45  ;;  %v1390_v45 = vld [vmem:[%s1942_s8 + $0x68] sm:$0xff]  }
  0xb4   : > { %v618_v47 = vpop.xlane.xlu0 %617 }
  0xb5   : > { %v625_v48 = vmul.f32 0.0078125, %v618_v47  ;;  %v1391_v47 = vld [vmem:[%s1942_s8 + $0x28] sm:$0xff]  }
  0xb6   : > { %v634_v49 = vpop.xlane.xlu1 %633 }
  0xb7   : > { %v645_v50 = vmul.f32 %v625_v48, %v625_v48  ;;  %v641_v51 = vmul.f32 0.0078125, %v634_v49  ;;  %v653_v9 = vsub.f32 %v1709_v44, %v625_v48  ;;  %v1256_v44 = vld [vmem:[%s1939_s5] ss:$0 sm:$0xff] }
  0xb8   : > { %v620_v52 = vpop.xlane.xlu0 %619  ;;  %v1392_v48 = vld [vmem:[%s1942_s8 + $0x60] sm:$0xff]  }
  0xb9   : > { %v649_v53 = vsub.f32 %v641_v51, %v645_v50  ;;  %v626_v54 = vmul.f32 0.0078125, %v620_v52  ;;  %v1393_v49 = vld [vmem:[%s1942_s8 + $0x20] sm:$0xff]   ;;  %v1394_v50 = vld [vmem:[%s1942_s8 + $0x58] sm:$0xff]   ;;  %v1396_v52 = vld [vmem:[%s1942_s8 + $0x50] sm:$0xff]  }
  0xba   : > { %v636_v55 = vpop.xlane.xlu1 %635  ;;  %v1395_v51 = vld [vmem:[%s1942_s8 + $0x18] sm:$0xff]  }
  0xbb   : > { %v657_v56 = vadd.f32 1e-05, %v649_v53  ;;  %v646_v12 = vmul.f32 %v626_v54, %v626_v54  ;;  %v642_v57 = vmul.f32 0.0078125, %v636_v55  ;;  %v654_v21 = vsub.f32 %v1728_v60, %v626_v54  ;;  %v1397_v53 = vld [vmem:[%s1942_s8 + $0x10] sm:$0xff]   ;;  %v1398_v54 = vld [vmem:[%s1942_s8 + $0x48] sm:$0xff]  }
  0xbc   : > { %v1399_v55 = vld [vmem:[%s1942_s8 + $0x8] sm:$0xff]  }
  0xbd   : > { %1402 = vrsqrt.f32 %v657_v56  ;;  %v650_v58 = vsub.f32 %v642_v57, %v646_v12  ;;  %v1400_v56 = vld [vmem:[%s1942_s8 + $0x40] sm:$0xff]  }
  0xbe   : > { %v1401_v12 = vld [vmem:[%s1942_s8] sm:$0xff]  }
  0xbf   : > { %v622_v59 = vpop.xlane.xlu0 %621  ;;  %v658_v61 = vadd.f32 1e-05, %v650_v58  ;;  %v709_v57 = vld [vmem:[%s1941_s7] sm:$0x3] }
  0xc0   : > { %v627_v62 = vmul.f32 0.0078125, %v622_v59  ;;  %v714_v58 = vrot.slane %v709_v57, %v486_v4  ;;  %v718_v59 = vrot.slane %v709_v57, %v508_v5 }
  0xc1   : > { %1404 = vrsqrt.f32 %v658_v61 }
  0xc2   : > { %v647_v63 = vmul.f32 %v627_v62, %v627_v62  ;;  %v655_v32 = vsub.f32 %v1744_v13, %v627_v62  ;;  %v1388_v13 = vld [vmem:[%s1942_s8 + $0x70] sm:$0xff]  }
  0xc3   : > { %v638_v0 = vpop.xlane.xlu0 %637 }
  0xc4   : > { %v643_v2 = vmul.f32 0.0078125, %v638_v0 }
  0xc6   : > { %v651_v3 = vsub.f32 %v643_v2, %v647_v63  ;;  %v624_v6 = vpop.xlane.xlu1 %623 }
  0xc7   : > { %v628_v7 = vmul.f32 0.0078125, %v624_v6 }
  0xc8   : > { %v659_v8 = vadd.f32 1e-05, %v651_v3 }
  0xc9   : > { %v648_v10 = vmul.f32 %v628_v7, %v628_v7  ;;  %v656_v33 = vsub.f32 %v1751_v19, %v628_v7  ;;  %v1389_v19 = vld [vmem:[%s1942_s8 + $0x30] sm:$0xff]  }
  0xca   : > { %v1403_v16 = vpop.eup %1402  ;;  %v640_v17 = vpop.xlane.xlu1 %639  ;;  %1406 = vrsqrt.f32 %v659_v8 }
  0xcb   : > { %v644_v11 = vmul.f32 0.0078125, %v640_v17  ;;  %v665_v14 = vmul.f32 %v1403_v16, %v653_v9 }
  0xcd   : > { %v652_v18 = vsub.f32 %v644_v11, %v648_v10  ;;  %v676_v28 = vmul.f32 %v1255_v15, %v665_v14 }
  0xce   : > { %v1405_v23 = vpop.eup %1404 }
  0xcf   : > { %v660_v26 = vadd.f32 1e-05, %v652_v18  ;;  %v666_v27 = vmul.f32 %v1405_v23, %v654_v21  ;;  %v687_v24 = vadd.f32 %v1256_v44, %v676_v28 }
  0xd1   : > { %1408 = vrsqrt.f32 %v660_v26  ;;  %v677_v22 = vmul.f32 %v1255_v15, %v666_v27 }
  0xd3   : > { %v688_v29 = vadd.f32 %v1256_v44, %v677_v22 }
  0xd5   : > { %v691_v30 = vpack.c.bf16 %v688_v29, %v687_v24 }
  0xd7   : > { %834 = vmatmul.mubr.bf16.vlgmr.msra.gmra.mxu0 %v691_v30  ;;  %v1407_v31 = vpop.eup %1406 }
  0xd8   : > { %843 = vmatprep.mubr.bf16.mxu0 %v1466_v42  ;;  %v667_v60 = vmul.f32 %v1407_v31, %v655_v32  ;;  %v1387_v42 = vld [vmem:[%s1942_s8 + $0x38] sm:$0xff]  }
  0xd9   : > { %1294 = vmatpush3.bf16.msra.mxu1 %v1387_v42 }
  0xda   : > { %v678_v36 = vmul.f32 %v1255_v15, %v667_v60  ;;  %1295 = vmatprep.subr.bf16.mxu1 %v1388_v13 }
  0xdc   : > { %v689_v38 = vadd.f32 %v1256_v44, %v678_v36 }
  0xdd   : > { %1296 = vmatpush3.bf16.msra.mxu1 %v1389_v19 }
  0xde   : > { %v1409_v34 = vpop.eup %1408  ;;  %1297 = vmatprep.subr.bf16.mxu1 %v1390_v45 }
  0xdf   : > { %v668_v35 = vmul.f32 %v1409_v34, %v656_v33 }
  0xe1   : > { %v679_v37 = vmul.f32 %v1255_v15, %v668_v35  ;;  %1298 = vmatpush3.bf16.msra.mxu1 %v1391_v47 }
  0xe2   : > { %1299 = vmatprep.subr.bf16.mxu1 %v1392_v48 }
  0xe3   : > { %v690_v39 = vadd.f32 %v1256_v44, %v679_v37 }
  0xe5   : > { %v692_v41 = vpack.c.bf16 %v690_v39, %v689_v38  ;;  %1300 = vmatpush3.bf16.msra.mxu1 %v1393_v49 }
  0xe6   : > { %1301 = vmatprep.subr.bf16.mxu1 %v1394_v50 }
  0xe7   : > { %844 = vmatmul.mubr.bf16.gmra.mxu0 %v692_v41 }
  0xe9   : > { %1302 = vmatpush3.bf16.msra.mxu1 %v1395_v51 }
  0xea   : > { %1303 = vmatprep.subr.bf16.mxu1 %v1396_v52 }
  0xed   : > { %1304 = vmatpush3.bf16.msra.mxu1 %v1397_v53 }
  0xee   : > { %1305 = vmatprep.subr.bf16.mxu1 %v1398_v54 }
  0xf1   : > { %1306 = vmatpush3.bf16.msra.mxu1 %v1399_v55 }
  0xf2   : > { %1307 = vmatprep.subr.bf16.mxu1 %v1400_v56 }
  0xf5   : > { %1308 = vmatpush3.bf16.msra.mxu1 %v1401_v12 }
 0x197   : > { %v835_v61 = vpop.f32.mrf.mxu0 }
 0x198   : > { %v1869_v62 = vadd.f32 %v835_v61, %v714_v58 }
 0x199   : > { %v837_v63 = vpop.f32.mrf.mxu0 }
 0x19a   : > { %v854_v0 = vmul.f32 %v1869_v62, %v1869_v62  ;;  %v1873_v2 = vadd.f32 %v837_v63, %v718_v59 }
 0x19b   : > { %v839_v3 = vpop.f32.mrf.mxu0 }
 0x19c   : > { %v862_v6 = vmul.f32 %v854_v0, %v1869_v62  ;;  %v855_v7 = vmul.f32 %v1873_v2, %v1873_v2  ;;  %v1878_v8 = vadd.f32 %v839_v3, %v714_v58 }
 0x19d   : > { %v841_v4 = vpop.f32.mrf.mxu0 }
 0x19e   : > { %v870_v1 = vmul.f32 0.044715, %v862_v6  ;;  %v863_v5 = vmul.f32 %v855_v7, %v1873_v2  ;;  %v856_v9 = vmul.f32 %v1878_v8, %v1878_v8  ;;  %v1883_v16 = vadd.f32 %v841_v4, %v718_v59 }
 0x1a0   : > { %v878_v17 = vadd.f32 %v870_v1, %v1869_v62  ;;  %v871_v10 = vmul.f32 0.044715, %v863_v5  ;;  %v864_v11 = vmul.f32 %v856_v9, %v1878_v8  ;;  %v857_v14 = vmul.f32 %v1883_v16, %v1883_v16 }
 0x1a2   : > { %v886_v15 = vmul.f32 0.7978846, %v878_v17  ;;  %v879_v21 = vadd.f32 %v871_v10, %v1873_v2  ;;  %v872_v18 = vmul.f32 0.044715, %v864_v11  ;;  %v865_v23 = vmul.f32 %v857_v14, %v1883_v16 }
 0x1a4   : > { %v880_v26 = vadd.f32 %v872_v18, %v1878_v8  ;;  %v873_v27 = vmul.f32 0.044715, %v865_v23  ;;  %v887_v28 = vmul.f32 0.7978846, %v879_v21  ;;  %1410 = vtanh.f32 %v886_v15 }
 0x1a6   : > { %v888_v44 = vmul.f32 0.7978846, %v880_v26  ;;  %v881_v22 = vadd.f32 %v873_v27, %v1883_v16  ;;  %1412 = vtanh.f32 %v887_v28 }
 0x1a7   : > { %v845_v24 = vpop.f32.mrf.mxu0 }
 0x1a8   : > { %1414 = vtanh.f32 %v888_v44  ;;  %v1893_v29 = vadd.f32 %v845_v24, %v714_v58  ;;  %v889_v30 = vmul.f32 0.7978846, %v881_v22 }
 0x1a9   : > { %v847_v31 = vpop.f32.mrf.mxu0 }
 0x1aa   : > { %v858_v32 = vmul.f32 %v1893_v29, %v1893_v29  ;;  %v848_v60 = vadd.f32 %v847_v31, %v718_v59  ;;  %1416 = vtanh.f32 %v889_v30 }
 0x1ab   : > { %v849_v33 = vpop.f32.mrf.mxu0 }
 0x1ac   : > { %v866_v34 = vmul.f32 %v858_v32, %v1893_v29  ;;  %v859_v35 = vmul.f32 %v848_v60, %v848_v60  ;;  %v850_v36 = vadd.f32 %v849_v33, %v714_v58 }
 0x1ad   : > { %v851_v37 = vpop.f32.mrf.mxu0 }
 0x1ae   : > { %v874_v38 = vmul.f32 0.044715, %v866_v34  ;;  %v867_v39 = vmul.f32 %v859_v35, %v848_v60  ;;  %v860_v41 = vmul.f32 %v850_v36, %v850_v36  ;;  %v852_v43 = vadd.f32 %v851_v37, %v718_v59  ;;  %v1273_v35 = vld [vmem:[%s1943_s9] ss:$0 sm:$0xff] }
 0x1b0   : > { %v882_v42 = vadd.f32 %v874_v38, %v1893_v29  ;;  %v875_v13 = vmul.f32 0.044715, %v867_v39  ;;  %v868_v19 = vmul.f32 %v860_v41, %v850_v36  ;;  %v861_v45 = vmul.f32 %v852_v43, %v852_v43 }
 0x1b1   : > { %v1411_v47 = vpop.eup %1410 }
 0x1b2   : > { %v890_v48 = vmul.f32 0.7978846, %v882_v42  ;;  %v883_v49 = vadd.f32 %v875_v13, %v848_v60  ;;  %v876_v50 = vmul.f32 0.044715, %v868_v19  ;;  %v869_v51 = vmul.f32 %v861_v45, %v852_v43 }
 0x1b3   : > { %v1413_v52 = vpop.eup %1412  ;;  %v902_v57 = vadd.f32 1.0, %v1411_v47 }
 0x1b4   : > { %v891_v53 = vmul.f32 0.7978846, %v883_v49  ;;  %v884_v54 = vadd.f32 %v876_v50, %v850_v36  ;;  %v877_v55 = vmul.f32 0.044715, %v869_v51  ;;  %1418 = vtanh.f32 %v890_v48 }
 0x1b5   : > { %v1415_v56 = vpop.eup %1414  ;;  %v903_v12 = vadd.f32 1.0, %v1413_v52  ;;  %v910_v4 = vmul.f32 0.5, %v902_v57 }
 0x1b6   : > { %1420 = vtanh.f32 %v891_v53  ;;  %v892_v58 = vmul.f32 0.7978846, %v884_v54  ;;  %v885_v59 = vadd.f32 %v877_v55, %v852_v43  ;;  %v904_v61 = vadd.f32 1.0, %v1415_v56 }
 0x1b7   : > { %v1417_v63 = vpop.eup %1416  ;;  %v911_v0 = vmul.f32 0.5, %v903_v12  ;;  %v918_v10 = vmul.f32 %v910_v4, %v1869_v62 }
 0x1b8   : > { %1422 = vtanh.f32 %v892_v58  ;;  %v893_v3 = vmul.f32 0.7978846, %v885_v59  ;;  %v905_v6 = vadd.f32 1.0, %v1417_v63  ;;  %v912_v7 = vmul.f32 0.5, %v904_v61 }
 0x1b9   : > { %v919_v9 = vmul.f32 %v911_v0, %v1873_v2 }
 0x1ba   : > { %1424 = vtanh.f32 %v893_v3  ;;  %v913_v1 = vmul.f32 0.5, %v905_v6  ;;  %v920_v5 = vmul.f32 %v912_v7, %v1878_v8 }
 0x1bc   : > { %v921_v17 = vmul.f32 %v913_v1, %v1883_v16  ;;  %v926_v14 = vpack.c.bf16 %v920_v5, %v918_v10 }
 0x1be   : > { %v927_v11 = vpack.c.bf16 %v921_v17, %v919_v9 }
 0x1c0   : > { %1097 = vmatprep.mubr.bf16.mxu1 %v927_v11 }
 0x1c1   : > { %1098 = vmatmul.mubr.bf16.vlgmr.msra.gmra.mxu1 %v926_v14  ;;  %v1419_v15 = vpop.eup %1418 }
 0x1c2   : > { %v906_v26 = vadd.f32 1.0, %v1419_v15 }
 0x1c3   : > { %v1421_v21 = vpop.eup %1420 }
 0x1c4   : > { %v907_v18 = vadd.f32 1.0, %v1421_v21  ;;  %v914_v24 = vmul.f32 0.5, %v906_v26 }
 0x1c5   : > { %v1423_v23 = vpop.eup %1422 }
 0x1c6   : > { %v908_v27 = vadd.f32 1.0, %v1423_v23  ;;  %v915_v22 = vmul.f32 0.5, %v907_v18  ;;  %v922_v62 = vmul.f32 %v914_v24, %v1893_v29 }
 0x1c7   : > { %v1425_v28 = vpop.eup %1424 }
 0x1c8   : > { %v909_v44 = vadd.f32 1.0, %v1425_v28  ;;  %v916_v8 = vmul.f32 0.5, %v908_v27  ;;  %v923_v16 = vmul.f32 %v915_v22, %v848_v60 }
 0x1ca   : > { %v917_v2 = vmul.f32 0.5, %v909_v44  ;;  %v924_v30 = vmul.f32 %v916_v8, %v850_v36  ;;  %v1290_v36 = vld [vmem:[%s1944_s10] ss:$0 sm:$0xff] }
 0x1cc   : > { %v925_v31 = vmul.f32 %v917_v2, %v852_v43  ;;  %v928_v33 = vpack.c.bf16 %v924_v30, %v922_v62 }
 0x1ce   : > { %v929_v32 = vpack.c.bf16 %v925_v31, %v923_v16 }
 0x1d0   : > { %1105 = vmatprep.mubr.bf16.mxu1 %v929_v32 }
 0x1d1   : > { %1106 = vmatmul.mubr.bf16.gmra.mxu1 %v928_v33 }
 0x281   : > { %v1309_v34 = vpop.f32.mrf.mxu1 }
 0x283   : > { %v1310_v37 = vpop.f32.mrf.mxu1 }
 0x284   : > { %v1311_v38 = vadd.f32 %v1310_v37, %v1309_v34 }
 0x285   : > { %v1312_v60 = vpop.f32.mrf.mxu1 }
 0x286   : > { %v1100_v39 = vadd.f32 %v1311_v38, %v1273_v35 }
 0x287   : > { %v1313_v41 = vpop.f32.mrf.mxu1 }
 0x288   : > { %v1121_v43 = vmul.f32 %v1290_v36, %v1100_v39  ;;  %v1314_v29 = vadd.f32 %v1313_v41, %v1312_v60 }
 0x28a   : > { %v1125_v42 = vadd.f32 %v1121_v43, %v1614_v20  ;;  %v1103_v13 = vadd.f32 %v1314_v29, %v1273_v35 }
 0x28c   : > { %1129 = vst [vmem:[%s455_s13] sm:$0xff] %v1125_v42  ;;  %v1122_v19 = vmul.f32 %v1290_v36, %v1103_v13 }
 0x28e   : > { %v1126_v45 = vadd.f32 %v1122_v19, %v1621_v25 }
 0x290   : > { %1130 = vst [vmem:[%s455_s13 + $0x8] sm:$0xff] %v1126_v45 }
 0x291   : > { %v1315_v47 = vpop.f32.mrf.mxu1 }
 0x293   : > { %v1316_v48 = vpop.f32.mrf.mxu1 }
 0x294   : > { %v1317_v49 = vadd.f32 %v1316_v48, %v1315_v47 }
 0x295   : > { %v1318_v50 = vpop.f32.mrf.mxu1 }
 0x296   : > { %v1108_v51 = vadd.f32 %v1317_v49, %v1273_v35 }
 0x297   : > { %v1319_v52 = vpop.f32.mrf.mxu1 }
 0x298   : > { %v1123_v53 = vmul.f32 %v1290_v36, %v1108_v51  ;;  %v1320_v54 = vadd.f32 %v1319_v52, %v1318_v50 }
 0x29a   : > { %v1127_v55 = vadd.f32 %v1123_v53, %v1653_v46  ;;  %v1111_v56 = vadd.f32 %v1320_v54, %v1273_v35 }
 0x29c   : > { %1131 = vst [vmem:[%s455_s13 + $0x10] sm:$0xff] %v1127_v55  ;;  %v1124_v12 = vmul.f32 %v1290_v36, %v1111_v56 }
 0x29e   : > { %v1128_v20 = vadd.f32 %v1124_v12, %v1703_v40 }
 0x2a0   : > { %1132 = vst [vmem:[%s455_s13 + $0x18] sm:$0xff] %v1128_v20 }
 0x2a1 PF: > { %s21_s21 = sadd.s32 1, %s1464_s21   ;;  %s1947_s17 = smov %s1456_s19 }
 0x2a2   : > { %p18_p8 = scmp.ge.s32.totalorder %s21_s21, 6   ;;  %s1948_s18 = smov %s1460_s20 }
 0x2a3   : > { %s1949_s19 = smov %s1952_s22  ;;  %s1950_s20 = smov %s1956_s23 }
 0x2a4   :  { %20 = sbr.rel (!%p18_p8) target bundleno = 3 (0x3), region = 97 }

</bundles_post_ra>
